<compile_context>
chip_gen: v5e
topology: v5e:2x2
jax: 0.10.0
libtpu: 0.0.40
codegen_flags: <defaults>
</compile_context>

<pallas_src>
import functools

import jax
import jax.numpy as jnp
from jax import lax
from jax.experimental import pallas as pl
from jax.experimental.pallas import tpu as pltpu

ALPHA = 0.8
GAMMA = 2

LANES = 128
SUBLANES = 8
CHUNK_ROWS = 256   # 256x128 f32 chunk = 128 KiB = 32 vregs per live value


def _round_up(x, m):
    return ((x + m - 1) // m) * m


def _default_block_rows():
    """Per-generation default tile height (rows of 128 f32 lanes)."""
    try:
        kind = jax.devices()[0].device_kind.lower()
    except Exception:
        kind = ""
    # v6e / v7x: 32 MiB default scoped VMEM -> 8192-row tiles (4 MiB/input,
    # 16 MiB double-buffered for two inputs) amortize the ~0.35us/step
    # pipeline overhead.  v5e / unknown: 16 MiB scoped default -> stay at
    # 4096 rows (8 MiB pipelined) for safety.
    if "v6" in kind or "v7" in kind or "7x" in kind:
        return 8192
    return 4096


def _focal_bce_partial_kernel(x_ref, t_ref, o_ref, *, block_rows, chunk_rows,
                              tail_elements, in_sigmoid):
    """Per-grid-step partial BCE sums folded into one (8, 128) f32 tile."""
    num_chunks = block_rows // chunk_rows
    cshape = (chunk_rows, LANES)

    def chunk_partial(c, masked):
        r0 = pl.multiple_of(c * chunk_rows, chunk_rows)
        x = x_ref[pl.ds(r0, chunk_rows), :].astype(jnp.float32)
        t = t_ref[pl.ds(r0, chunk_rows), :].astype(jnp.float32)

        if masked:
            # Local (within-block) flat index vs. static count of valid
            # elements in the last block -> no int32 overflow for any n.
            row = lax.broadcasted_iota(jnp.int32, cshape, 0) + c * chunk_rows
            lane = lax.broadcasted_iota(jnp.int32, cshape, 1)
            valid = (row * LANES + lane) < tail_elements
            fill = 0.0 if in_sigmoid else 1.0
            x = jnp.where(valid, x, fill)
            t = jnp.where(valid, t, fill)

        if in_sigmoid:
            # Numerically stable BCE-with-logits:
            #   max(x, 0) - x*t + log1p(exp(-|x|))
            bce = (jnp.maximum(x, 0.0) - x * t
                   + jnp.log1p(jnp.exp(-jnp.abs(x))))
        else:
            # Probabilities; clamp log terms at -100 exactly like
            # torch.nn.functional.binary_cross_entropy.
            log_p = jnp.maximum(jnp.log(x), -100.0)
            log_1mp = jnp.maximum(jnp.log(1.0 - x), -100.0)
            bce = -(t * log_p + (1.0 - t) * log_1mp)

        if masked:
            bce = jnp.where(valid, bce, 0.0)

        # Fold (chunk_rows, 128) -> (8, 128) with plain VPU adds.
        return bce.reshape(chunk_rows // SUBLANES, SUBLANES, LANES).sum(axis=0)

    acc0 = jnp.zeros((SUBLANES, LANES), jnp.float32)

    def run(masked):
        return lax.fori_loop(
            0, num_chunks, lambda c, acc: acc + chunk_partial(c, masked), acc0)

    i = pl.program_id(0)
    last = pl.num_programs(0) - 1

    @pl.when(i < last)
    def _():
        # Interior blocks: fully in-bounds, no iotas / masking.
        o_ref[...] = run(masked=False)

    @pl.when(i == last)
    def _():
        # Last block: mask the ragged tail (lane pad and/or short block).
        o_ref[...] = run(masked=True)


def focal_loss(inputs, targets, alpha=ALPHA, gamma=GAMMA, smooth=1,
               in_sigmoid=False, max_block_rows=None, chunk_rows=CHUNK_ROWS):
    del smooth  # unused by the reference forward
    x = jnp.reshape(inputs, (-1,))
    t = jnp.reshape(targets, (-1,))
    n = x.shape[0]

    # Keep HBM dtypes as-is; the f32 upcast happens inside the kernel after
    # the load (no separate wrapper-side cast pass over HBM).  Only rewrite
    # dtypes Mosaic loads awkwardly: bool -> int8, float64 -> float32.
    if x.dtype == jnp.bool_:
        x = x.astype(jnp.int8)
    elif x.dtype == jnp.float64:
        x = x.astype(jnp.float32)
    if t.dtype == jnp.bool_:
        t = t.astype(jnp.int8)
    elif t.dtype == jnp.float64:
        t = t.astype(jnp.float32)

    # Lane-dense 2-D slab; <128-element pad only when n % 128 != 0
    # (masked in-kernel on the last block).
    lane_pad = (-n) % LANES
    if lane_pad:
        x = jnp.pad(x, (0, lane_pad))
        t = jnp.pad(t, (0, lane_pad))
    rows = (n + lane_pad) // LANES
    x2 = x.reshape(rows, LANES)
    t2 = t.reshape(rows, LANES)

    if max_block_rows is None:
        max_block_rows = _default_block_rows()

    # Chunk: <= CHUNK_ROWS, multiple of 32 (f32/bf16/int8 sublane packing).
    chunk = _round_up(min(chunk_rows, rows, max_block_rows), 32)
    # Block: multiple of the chunk, capped by max_block_rows (rounded up).
    block_rows = min(_round_up(max_block_rows, chunk),
                     _round_up(rows, chunk))
    num_blocks = pl.cdiv(rows, block_rows)
    # Static count of valid elements in the last block (drives the tail mask).
    tail_elements = n - (num_blocks - 1) * block_rows * LANES

    kernel = functools.partial(
        _focal_bce_partial_kernel,
        block_rows=block_rows,
        chunk_rows=chunk,
        tail_elements=tail_elements,
        in_sigmoid=bool(in_sigmoid),
    )

    partials = pl.pallas_call(
        kernel,
        out_shape=jax.ShapeDtypeStruct((num_blocks, SUBLANES, LANES),
                                       jnp.float32),
        grid_spec=pltpu.PrefetchScalarGridSpec(
            num_scalar_prefetch=0,
            grid=(num_blocks,),
            in_specs=[
                pl.BlockSpec((block_rows, LANES), lambda i: (i, 0)),
                pl.BlockSpec((block_rows, LANES), lambda i: (i, 0)),
            ],
            out_specs=pl.BlockSpec((None, SUBLANES, LANES),
                                   lambda i: (i, 0, 0)),
        ),
        compiler_params=pltpu.CompilerParams(
            dimension_semantics=("parallel",),
        ),
    )(x2, t2)

    # Tiny epilogue in plain JAX: global mean + focal transform.
    bce = jnp.sum(partials) / jnp.float32(n)
    one_minus_exp = 1.0 - jnp.exp(-bce)
    if gamma == 2:
        powed = one_minus_exp * one_minus_exp  # exact; avoids pow via exp(log)
    else:
        powed = one_minus_exp ** gamma
    return alpha * powed * bce


def focal_loss_ref(inputs, targets, alpha=ALPHA, gamma=GAMMA,
                   in_sigmoid=False):
    p = jnp.reshape(inputs, (-1,)).astype(jnp.float32)
    t = jnp.reshape(targets, (-1,)).astype(jnp.float32)
    if in_sigmoid:
        p = jax.nn.sigmoid(p)
    log_p = jnp.maximum(jnp.log(p), -100.0)
    log_1mp = jnp.maximum(jnp.log(1.0 - p), -100.0)
    bce = jnp.mean(-(t * log_p + (1.0 - t) * log_1mp))
    return alpha * (1.0 - jnp.exp(-bce)) ** gamma * bce


if __name__ == "__main__":
    key = jax.random.PRNGKey(0)
    k1, k2, k3 = jax.random.split(key, 3)

    # NCHW, small: batch=2, channels=4, spatial=16x16 (2048 elements).
    shape = (2, 4, 16, 16)
    inputs = jax.random.uniform(k1, shape, jnp.float32, minval=0.01,
                                maxval=0.99)
    targets = (jax.random.uniform(k2, shape, jnp.float32) > 0.5).astype(
        jnp.float32)

    out = jax.block_until_ready(focal_loss(inputs, targets))
    ref = focal_loss_ref(inputs, targets)
    assert jnp.allclose(out, ref, rtol=1e-4, atol=1e-6), (out, ref)

    # Logits path (in_sigmoid=True).
    logits = jax.random.normal(k3, shape, jnp.float32) * 3.0
    out_s = jax.block_until_ready(focal_loss(logits, targets, in_sigmoid=True))
    ref_s = focal_loss_ref(logits, targets, in_sigmoid=True)
    assert jnp.allclose(out_s, ref_s, rtol=1e-4, atol=1e-6), (out_s, ref_s)

    # Integer targets passed straight through (in-kernel cast, no wrapper pass).
    targets_i32 = targets.astype(jnp.int32)
    out_i = jax.block_until_ready(focal_loss(inputs, targets_i32))
    ref_i = focal_loss_ref(inputs, targets_i32)
    assert jnp.allclose(out_i, ref_i, rtol=1e-4, atol=1e-6), (out_i, ref_i)

    # Ragged element count (not a multiple of 128) + small blocks so there is
    # at least one unmasked interior block and a masked ragged last block.
    shape2 = (3, 5, 17, 19)
    inputs2 = jax.random.uniform(k1, shape2, jnp.float32, minval=0.01,
                                 maxval=0.99)
    targets2 = (jax.random.uniform(k2, shape2, jnp.float32) > 0.5).astype(
        jnp.float32)
    out_r = jax.block_until_ready(focal_loss(inputs2, targets2,
                                             max_block_rows=32))
    ref_r = focal_loss_ref(inputs2, targets2)
    assert jnp.allclose(out_r, ref_r, rtol=1e-4, atol=1e-6), (out_r, ref_r)

    print("KERNEL_OK")
</pallas_src>

<mosaic_0001>
module attributes {stable_mosaic.version = 11 : i64} {
  func.func @_focal_bce_partial_kernel(%arg0: i32, %arg1: memref<32x128xf32, #tpu.memory_space<vmem>>, %arg2: memref<32x128xf32, #tpu.memory_space<vmem>>, %arg3: memref<1x8x128xf32, #tpu.memory_space<vmem>>) attributes {dimension_semantics = [#tpu.dimension_semantics<parallel>], iteration_bounds = array<i64: 1>, scalar_prefetch = 0 : i64, scratch_operands = 0 : i64, tpu.core_type = #tpu.core_type<tc>, window_params = [{transform_indices = @transform_0, window_bounds = array<i64: 32, 128>}, {transform_indices = @transform_1, window_bounds = array<i64: 32, 128>}, {transform_indices = @transform_2, window_bounds = array<i64: 1, 8, 128>}]} {
    %cst = arith.constant 0.000000e+00 : f32
    %0 = vector.broadcast %cst : f32 to vector<8x128xf32>
    %c0_i32 = arith.constant 0 : i32
    %1 = arith.cmpi slt, %arg0, %c0_i32 : i32
    %2 = arith.extui %1 : i1 to i32
    %c0_i32_0 = arith.constant 0 : i32
    %3 = arith.cmpi ne, %2, %c0_i32_0 : i32
    scf.if %3 {
      %c0_i32_3 = arith.constant 0 : i32
      %c32_i32 = arith.constant 32 : i32
      %7 = arith.muli %c0_i32_3, %c32_i32 : i32
      %8 = tpu.assume_multiple %7, 32 : i32
      %9 = arith.index_cast %8 : i32 to index
      %c0 = arith.constant 0 : index
      %10 = vector.load %arg1[%9, %c0] : memref<32x128xf32, #tpu.memory_space<vmem>>, vector<32x128xf32>
      %11 = arith.index_cast %8 : i32 to index
      %c0_4 = arith.constant 0 : index
      %12 = vector.load %arg2[%11, %c0_4] : memref<32x128xf32, #tpu.memory_space<vmem>>, vector<32x128xf32>
      %13 = math.log %10 : vector<32x128xf32>
      %cst_5 = arith.constant -1.000000e+02 : f32
      %14 = vector.broadcast %cst_5 : f32 to vector<32x128xf32>
      %15 = arith.maximumf %13, %14 : vector<32x128xf32>
      %cst_6 = arith.constant 1.000000e+00 : f32
      %16 = vector.broadcast %cst_6 : f32 to vector<32x128xf32>
      %17 = arith.subf %16, %10 : vector<32x128xf32>
      %18 = math.log %17 : vector<32x128xf32>
      %cst_7 = arith.constant -1.000000e+02 : f32
      %19 = vector.broadcast %cst_7 : f32 to vector<32x128xf32>
      %20 = arith.maximumf %18, %19 : vector<32x128xf32>
      %21 = arith.mulf %12, %15 : vector<32x128xf32>
      %cst_8 = arith.constant 1.000000e+00 : f32
      %22 = vector.broadcast %cst_8 : f32 to vector<32x128xf32>
      %23 = arith.subf %22, %12 : vector<32x128xf32>
      %24 = arith.mulf %23, %20 : vector<32x128xf32>
      %25 = arith.addf %21, %24 : vector<32x128xf32>
      %cst_9 = arith.constant 0.000000e+00 : f32
      %26 = vector.broadcast %cst_9 : f32 to vector<32x128xf32>
      %27 = arith.subf %26, %25 : vector<32x128xf32>
      %28 = vector.shape_cast %27 : vector<32x128xf32> to vector<4x8x128xf32>
      %cst_10 = arith.constant dense<0.000000e+00> : vector<8x128xf32>
      %29 = vector.multi_reduction <add>, %28, %cst_10 [0] : vector<4x8x128xf32> to vector<8x128xf32>
      %30 = arith.addf %0, %29 : vector<8x128xf32>
      %c1_i32 = arith.constant 1 : i32
      %c0_11 = arith.constant 0 : index
      %c0_12 = arith.constant 0 : index
      %c0_13 = arith.constant 0 : index
      %31 = vector.load %arg3[%c0_11, %c0_12, %c0_13] : memref<1x8x128xf32, #tpu.memory_space<vmem>>, vector<1x8x128xf32>
      %32 = vector.shape_cast %31 : vector<1x8x128xf32> to vector<8x128xf32>
      %33 = vector.shape_cast %30 : vector<8x128xf32> to vector<1x8x128xf32>
      tpu.vector_store %arg3[%c0_11, %c0_12, %c0_13], %33 {strides = array<i32>} : memref<1x8x128xf32, #tpu.memory_space<vmem>>, vector<1x8x128xf32>,
    } else {
    }
    %c0_i32_1 = arith.constant 0 : i32
    %4 = arith.cmpi eq, %arg0, %c0_i32_1 : i32
    %5 = arith.extui %4 : i1 to i32
    %c0_i32_2 = arith.constant 0 : i32
    %6 = arith.cmpi ne, %5, %c0_i32_2 : i32
    scf.if %6 {
      %c0_i32_3 = arith.constant 0 : i32
      %c32_i32 = arith.constant 32 : i32
      %7 = arith.muli %c0_i32_3, %c32_i32 : i32
      %8 = tpu.assume_multiple %7, 32 : i32
      %9 = arith.index_cast %8 : i32 to index
      %c0 = arith.constant 0 : index
      %10 = vector.load %arg1[%9, %c0] : memref<32x128xf32, #tpu.memory_space<vmem>>, vector<32x128xf32>
      %11 = arith.index_cast %8 : i32 to index
      %c0_4 = arith.constant 0 : index
      %12 = vector.load %arg2[%11, %c0_4] : memref<32x128xf32, #tpu.memory_space<vmem>>, vector<32x128xf32>
      %13 = tpu.iota {dimensions = array<i32: 0>} : vector<32x128xi32>
      %c32_i32_5 = arith.constant 32 : i32
      %14 = arith.muli %c0_i32_3, %c32_i32_5 : i32
      %15 = vector.broadcast %14 : i32 to vector<32x128xi32>
      %16 = arith.addi %13, %15 : vector<32x128xi32>
      %17 = tpu.iota {dimensions = array<i32: 1>} : vector<32x128xi32>
      %c128_i32 = arith.constant 128 : i32
      %18 = vector.broadcast %c128_i32 : i32 to vector<32x128xi32>
      %19 = arith.muli %16, %18 : vector<32x128xi32>
      %20 = arith.addi %19, %17 : vector<32x128xi32>
      %c2048_i32 = arith.constant 2048 : i32
      %21 = vector.broadcast %c2048_i32 : i32 to vector<32x128xi32>
      %22 = arith.cmpi slt, %20, %21 : vector<32x128xi32>
      %cst_6 = arith.constant 1.000000e+00 : f32
      %23 = vector.broadcast %cst_6 : f32 to vector<32x128xf32>
      %24 = arith.select %22, %10, %23 : vector<32x128xi1>, vector<32x128xf32>
      %cst_7 = arith.constant 1.000000e+00 : f32
      %25 = vector.broadcast %cst_7 : f32 to vector<32x128xf32>
      %26 = arith.select %22, %12, %25 : vector<32x128xi1>, vector<32x128xf32>
      %27 = math.log %24 : vector<32x128xf32>
      %cst_8 = arith.constant -1.000000e+02 : f32
      %28 = vector.broadcast %cst_8 : f32 to vector<32x128xf32>
      %29 = arith.maximumf %27, %28 : vector<32x128xf32>
      %cst_9 = arith.constant 1.000000e+00 : f32
      %30 = vector.broadcast %cst_9 : f32 to vector<32x128xf32>
      %31 = arith.subf %30, %24 : vector<32x128xf32>
      %32 = math.log %31 : vector<32x128xf32>
      %cst_10 = arith.constant -1.000000e+02 : f32
      %33 = vector.broadcast %cst_10 : f32 to vector<32x128xf32>
      %34 = arith.maximumf %32, %33 : vector<32x128xf32>
      %35 = arith.mulf %26, %29 : vector<32x128xf32>
      %cst_11 = arith.constant 1.000000e+00 : f32
      %36 = vector.broadcast %cst_11 : f32 to vector<32x128xf32>
      %37 = arith.subf %36, %26 : vector<32x128xf32>
      %38 = arith.mulf %37, %34 : vector<32x128xf32>
      %39 = arith.addf %35, %38 : vector<32x128xf32>
      %cst_12 = arith.constant 0.000000e+00 : f32
      %40 = vector.broadcast %cst_12 : f32 to vector<32x128xf32>
      %41 = arith.subf %40, %39 : vector<32x128xf32>
      %cst_13 = arith.constant 0.000000e+00 : f32
      %42 = vector.broadcast %cst_13 : f32 to vector<32x128xf32>
      %43 = arith.select %22, %41, %42 : vector<32x128xi1>, vector<32x128xf32>
      %44 = vector.shape_cast %43 : vector<32x128xf32> to vector<4x8x128xf32>
      %cst_14 = arith.constant dense<0.000000e+00> : vector<8x128xf32>
      %45 = vector.multi_reduction <add>, %44, %cst_14 [0] : vector<4x8x128xf32> to vector<8x128xf32>
      %46 = arith.addf %0, %45 : vector<8x128xf32>
      %c1_i32 = arith.constant 1 : i32
      %c0_15 = arith.constant 0 : index
      %c0_16 = arith.constant 0 : index
      %c0_17 = arith.constant 0 : index
      %47 = vector.load %arg3[%c0_15, %c0_16, %c0_17] : memref<1x8x128xf32, #tpu.memory_space<vmem>>, vector<1x8x128xf32>
      %48 = vector.shape_cast %47 : vector<1x8x128xf32> to vector<8x128xf32>
      %49 = vector.shape_cast %46 : vector<8x128xf32> to vector<1x8x128xf32>
      tpu.vector_store %arg3[%c0_15, %c0_16, %c0_17], %49 {strides = array<i32>} : memref<1x8x128xf32, #tpu.memory_space<vmem>>, vector<1x8x128xf32>,
    } else {
    }
    return
  }
  func.func @transform_0(%arg0: i32) -> (i32, i32) {
    %c0_i32 = arith.constant 0 : i32
    %c0_i32_0 = arith.constant 0 : i32
    return %arg0, %c0_i32 : i32, i32
  }
  func.func @transform_1(%arg0: i32) -> (i32, i32) {
    %c0_i32 = arith.constant 0 : i32
    %c0_i32_0 = arith.constant 0 : i32
    return %arg0, %c0_i32 : i32, i32
  }
  func.func @transform_2(%arg0: i32) -> (i32, i32, i32) {
    %c0_i32 = arith.constant 0 : i32
    %c0_i32_0 = arith.constant 0 : i32
    %c0_i32_1 = arith.constant 0 : i32
    return %arg0, %c0_i32, %c0_i32_0 : i32, i32, i32
  }
}

</mosaic_0001>

<bundles_post_ra>
// kernel: tpu_custom_call.1
= control target key start
LH: loop header
LB: loop body
LE: loop exit
PB: predicated region body
PF: predicated region fallthrough
CT: control target
= control target key end

     0   :  { %7 = vsyncpa [#allocation3], 0  ;;  %s387_s0 = inlined_call_operand.hbm [shape: f32[16,128], index: 0, kind: input, shape index: {}]   ;;  %s388_s1 = inlined_call_operand.hbm [shape: f32[16,128], index: 1, kind: input, shape index: {}]   ;;  %s389_s2 = inlined_call_operand.hbm [shape: f32[1,8,128], index: 2, kind: output, shape index: {}]  }
   0x1   :  { %8 = vsyncpa [#allocation6], 0 }
   0x2   :  { %9 = vsyncpa [#allocation4], 0 }
   0x3   :  { %13 = vsyncadd [#allocation3], 256  ;;  %s14_s11 = sshll.u32 %s387_s0, 4  ;;  %s322_s12 = smov [#allocation2]   ;;  %s15_s11 = int_to_ptr.hbm [resolvable:$true] %s14_s11 }
   0x4   :  { %s16_s13 = sshll.u32 %s322_s12, 4  ;;  %s323_s14 = smov 128   ;;  %s17_s13 = int_to_ptr.vmem [resolvable:$true] %s16_s13 }
   0x5   :  { %s324_s15 = smov 8  }
   0x6   :  { %22 = dma.hbm_to_vmem [thread:$0]  %s15_s11, 256, %s17_s13, [#allocation3], %s323_s14, %s323_s14, %s324_s15  }
   0x7   :  { %26 = vsyncadd [#allocation6], 256  ;;  %s27_s18 = sshll.u32 %s388_s1, 4  ;;  %s325_s19 = smov [#allocation5]   ;;  %s28_s18 = int_to_ptr.hbm [resolvable:$true] %s27_s18 }
   0x8   :  { %s29_s20 = sshll.u32 %s325_s19, 4  ;;  %s30_s20 = int_to_ptr.vmem [resolvable:$true] %s29_s20 }
   0x9   :  { %35 = dma.hbm_to_vmem [thread:$0]  %s28_s18, 256, %s30_s20, [#allocation6], %s323_s14, %s323_s14, %s324_s15  }
   0xa   :  { %316 = dma.done.wait [#allocation3], 512  }
   0xb   :  { %317 = vsyncadd [#allocation3], 4294966784 }
   0xc   :  { %318 = dma.done.wait [#allocation6], 512  }
   0xd   :  { %319 = vsyncadd [#allocation6], 4294966784  ;;  %v121_v0 = vlaneseq  ;;  %v113_v11 = vld [vmem:[#allocation2] sm:$0xff]  ;;  %v114_v12 = vld [vmem:[#allocation2 + $0x8] sm:$0xff]  ;;  %s326_s0 = smov [#allocation7]   ;;  %s212_s23 = sshll.u32 %s389_s2, 4  ;;  %s213_s23 = int_to_ptr.hbm [resolvable:$true] %s212_s23 }
   0xe   :  { %v115_v13 = vld [vmem:[#allocation2 + $0x10] sm:$0xff]  ;;  %v116_v14 = vld [vmem:[#allocation2 + $0x18] sm:$0xff]  ;;  %v117_v27 = vld [vmem:[#allocation5] sm:$0xff]  ;;  %s210_s1 = sshll.u32 %s326_s0, 4  ;;  %s211_s1 = int_to_ptr.vmem [resolvable:$true] %s210_s1 }
   0xf   :  { %v122_v1 = vshrl.u32 %v121_v0, 7  ;;  %v127_v2 = vand.u32 127, %v121_v0  ;;  %v118_v28 = vld [vmem:[#allocation5 + $0x8] sm:$0xff]  ;;  %v119_v31 = vld [vmem:[#allocation5 + $0x10] sm:$0xff]  ;;  %v120_v33 = vld [vmem:[#allocation5 + $0x18] sm:$0xff] }
  0x11   :  { %v123_v3 = vadd.s32 8, %v122_v1  ;;  %v124_v4 = vadd.s32 16, %v122_v1  ;;  %v125_v5 = vadd.s32 24, %v122_v1  ;;  %v128_v6 = vmul.u32 128, %v122_v1 }
  0x13   :  { %v129_v7 = vmul.u32 128, %v123_v3  ;;  %v130_v8 = vmul.u32 128, %v124_v4  ;;  %v131_v9 = vmul.u32 128, %v125_v5  ;;  %v348_v10 = vadd.s32 %v128_v6, %v127_v2 }
  0x15   :  { %v350_v15 = vadd.s32 %v129_v7, %v127_v2  ;;  %v352_v16 = vadd.s32 %v130_v8, %v127_v2  ;;  %v354_v17 = vadd.s32 %v131_v9, %v127_v2  ;;  %vm136_vm0 = vcmp.lt.s32.totalorder %v348_v10, 2048 }
  0x16   :  { %v140_v18 = vsel %vm136_vm0, %v113_v11, 1.0  ;;  %v144_v34 = vsel %vm136_vm0, %v117_v27, 1.0 }
  0x17   :  { %vm137_vm1 = vcmp.lt.s32.totalorder %v350_v15, 2048  ;;  %vm138_vm2 = vcmp.lt.s32.totalorder %v352_v16, 2048  ;;  %vm139_vm3 = vcmp.lt.s32.totalorder %v354_v17, 2048  ;;  %228 = vlog2.f32 %v140_v18 }
  0x18   :  { %v141_v19 = vsel %vm137_vm1, %v114_v12, 1.0  ;;  %v142_v20 = vsel %vm138_vm2, %v115_v13, 1.0  ;;  %v143_v21 = vsel %vm139_vm3, %v116_v14, 1.0  ;;  %v160_v22 = vsub.f32 1.0, %v140_v18 }
  0x19   :  { %230 = vlog2.f32 %v141_v19  ;;  %v161_v23 = vsub.f32 1.0, %v141_v19  ;;  %v162_v24 = vsub.f32 1.0, %v142_v20  ;;  %v163_v25 = vsub.f32 1.0, %v143_v21 }
  0x1a   :  { %232 = vlog2.f32 %v142_v20  ;;  %v145_v37 = vsel %vm137_vm1, %v118_v28, 1.0  ;;  %v146_v41 = vsel %vm138_vm2, %v119_v31, 1.0  ;;  %v147_v45 = vsel %vm139_vm3, %v120_v33, 1.0 }
  0x1b   :  { %234 = vlog2.f32 %v143_v21  ;;  %v180_v48 = vsub.f32 1.0, %v144_v34  ;;  %v181_v52 = vsub.f32 1.0, %v145_v37  ;;  %v182_v57 = vsub.f32 1.0, %v146_v41 }
  0x1c   :  { %236 = vlog2.f32 %v160_v22  ;;  %v183_v61 = vsub.f32 1.0, %v147_v45 }
  0x1d   :  { %v229_v26 = vpop.eup %228  ;;  %238 = vlog2.f32 %v161_v23 }
  0x1e   :  { %v149_v29 = vmul.f32 0.6931472, %v229_v26  ;;  %240 = vlog2.f32 %v162_v24 }
  0x1f   :  { %v231_v30 = vpop.eup %230  ;;  %242 = vlog2.f32 %v163_v25 }
  0x20   :  { %v233_v32 = vpop.eup %232  ;;  %v151_v35 = vmul.f32 0.6931472, %v231_v30  ;;  %v156_v39 = vmax.f32 %v149_v29, -100.0 }
  0x21   :  { %v235_v36 = vpop.eup %234  ;;  %v153_v38 = vmul.f32 0.6931472, %v233_v32 }
  0x22   :  { %v237_v40 = vpop.eup %236  ;;  %v155_v42 = vmul.f32 0.6931472, %v235_v36  ;;  %v157_v43 = vmax.f32 %v151_v35, -100.0  ;;  %v176_v56 = vmul.f32 %v156_v39, %v144_v34 }
  0x23   :  { %v239_v44 = vpop.eup %238  ;;  %v158_v46 = vmax.f32 %v153_v38, -100.0  ;;  %v165_v47 = vmul.f32 0.6931472, %v237_v40 }
  0x24   :  { %v241_v49 = vpop.eup %240  ;;  %v159_v50 = vmax.f32 %v155_v42, -100.0  ;;  %v167_v51 = vmul.f32 0.6931472, %v239_v44  ;;  %v177_v60 = vmul.f32 %v157_v43, %v145_v37 }
  0x25   :  { %v243_v53 = vpop.eup %242  ;;  %v169_v54 = vmul.f32 0.6931472, %v241_v49  ;;  %v172_v55 = vmax.f32 %v165_v47, -100.0  ;;  %v178_v63 = vmul.f32 %v158_v46, %v146_v41 }
  0x26   :  { %v171_v58 = vmul.f32 0.6931472, %v243_v53  ;;  %v173_v59 = vmax.f32 %v167_v51, -100.0  ;;  %v179_v2 = vmul.f32 %v159_v50, %v147_v45 }
  0x27   :  { %v174_v62 = vmax.f32 %v169_v54, -100.0  ;;  %v184_v0 = vmul.f32 %v180_v48, %v172_v55 }
  0x28   :  { %v175_v1 = vmax.f32 %v171_v58, -100.0  ;;  %v185_v3 = vmul.f32 %v181_v52, %v173_v59 }
  0x29   :  { %v186_v4 = vmul.f32 %v182_v57, %v174_v62  ;;  %v188_v5 = vadd.f32 %v184_v0, %v176_v56 }
  0x2a   :  { %v187_v6 = vmul.f32 %v183_v61, %v175_v1  ;;  %v189_v7 = vadd.f32 %v185_v3, %v177_v60 }
  0x2b   :  { %v190_v8 = vadd.f32 %v186_v4, %v178_v63  ;;  %v192_v9 = vsub.f32 0.0, %v188_v5 }
  0x2c   :  { %v191_v11 = vadd.f32 %v187_v6, %v179_v2  ;;  %v193_v12 = vsub.f32 0.0, %v189_v7 }
  0x2d   :  { %v194_v13 = vsub.f32 0.0, %v190_v8  ;;  %v196_v14 = vsel %vm136_vm0, %v192_v9, 0.0 }
  0x2e   :  { %v195_v18 = vsub.f32 0.0, %v191_v11  ;;  %v197_v19 = vsel %vm137_vm1, %v193_v12, 0.0 }
  0x2f   :  { %v198_v20 = vsel %vm138_vm2, %v194_v13, 0.0  ;;  %v200_v21 = vadd.f32 %v197_v19, %v196_v14 }
  0x30   :  { %v199_v22 = vsel %vm139_vm3, %v195_v18, 0.0 }
  0x31   :  { %v201_v23 = vadd.f32 %v200_v21, %v198_v20 }
  0x33   :  { %v202_v10 = vadd.f32 %v201_v23, %v199_v22 }
  0x35   :  { %204 = vst [vmem:[#allocation7] sm:$0xff] %v202_v10 }
  0x36   :  { %215 = dma.vmem_to_hbm [thread:$0]  %s211_s1, 128, %s213_s23, [#allocation4]  }
  0x37   :  { %320 = dma.done.wait [#allocation4], 128  }
  0x38   :  { %321 = vsyncadd [#allocation4], 4294967168 }
  0x39   :  { %220 = vsyncpa [#allocation3], 1 }
  0x3a   :  { %221 = vsyncpa [#allocation6], 1 }
  0x3b   :  { %222 = vsyncpa [#allocation4], 1 }

</bundles_post_ra>
